<compile_context>
chip_gen: v6e
topology: v6e:2x2x1
jax: 0.10.0
libtpu: 0.0.40
codegen_flags: <defaults>
</compile_context>

<pallas_src>
import jax
import jax.numpy as jnp
from jax import lax
from jax.experimental import pallas as pl
from jax.experimental.pallas import tpu as pltpu


def _gil_kernel(recv_ref, sendt_ref, edge_ref, adj_ref, web_ref, wnagg_ref,
                nbase_ref, out_ref, acc_ref):
    """One (batch b, receiver-tile i, sender-tile j) grid step.

    Shapes seen by the kernel (TI=TILE_I, TJ=TILE_J):
      recv_ref : (1, TI, E)      f32  node_info_i @ We_r^T + be
      sendt_ref: (1, E, TJ)      f32  (node_info_j @ We_s^T)^T
      edge_ref : (1, TI, D3, TJ)      edge_attr, sender dim in lanes
      adj_ref  : (1, TI, TJ)
      web_ref  : (TI, E, D3)          We_e broadcast over the receiver tile
      wnagg_ref: (D1, E)         f32  Wn[:, Dni:]
      nbase_ref: (1, D1, TI)     f32  (node_info_i @ Wn_ni^T + bn)^T
      out_ref  : (1, D1, TI)
      acc_ref  : (TI, E)         f32  VMEM scratch accumulator
    """
    j = pl.program_id(2)

    @pl.when(j == 0)
    def _():
        acc_ref[...] = jnp.zeros_like(acc_ref)

    # Edge linear, lane-dense in the sender dim:
    #   ea[i, e, j] = sum_d We_e[e, d] * edge_attr[i, d, j]
    # canonical batched matmul (TI, E, D3) @ (TI, D3, TJ) -> (TI, E, TJ), f32 acc.
    ea = lax.dot_general(
        web_ref[...], edge_ref[0],
        dimension_numbers=(((2,), (1,)), ((0,), (0,))),
        preferred_element_type=jnp.float32)

    lin = ea + recv_ref[0][:, :, None] + sendt_ref[0][None, :, :]
    code = jnp.maximum(lin, 0.01 * lin)        # F.leaky_relu, negative_slope=0.01

    adj = adj_ref[0].astype(jnp.float32)       # (TI, TJ)
    # adj-weighted aggregation over this sender chunk (lane-dim reduction).
    acc_ref[...] += jnp.sum(code * adj[:, None, :], axis=2)

    @pl.when(j == pl.num_programs(2) - 1)
    def _():
        # out_t[d, i] = nbase_t[d, i] + sum_e Wn_agg[d, e] * acc[i, e]
        out_t = lax.dot_general(
            wnagg_ref[...], acc_ref[...],
            dimension_numbers=(((1,), (1,)), ((), ())),
            preferred_element_type=jnp.float32) + nbase_ref[0]
        out_ref[0] = out_t.astype(out_ref.dtype)


def _round_up(x, m):
    return ((x + m - 1) // m) * m


def _pick_tile(n, target, align):
    """Largest multiple-of-`align` divisor of n that is <= target (else n)."""
    if n <= target or n % align != 0:
        return n
    t = (min(target, n) // align) * align
    while t >= align:
        if n % t == 0:
            return t
        t -= align
    return n


def _vmem_estimate(ti, tj, d1, d3, e, edge_item, adj_item, out_item):
    """Conservative per-step VMEM bytes: double-buffered inputs/outputs with
    their (8,128)-padded layouts, scratch, and the materialized f32 temps."""
    lane = lambda x: _round_up(x, 128)
    sub = lambda x: _round_up(x, 8)
    est = 0
    est += 2 * ti * sub(d3) * lane(tj) * edge_item        # edge tile (dbl-buffered)
    est += 2 * sub(ti) * lane(tj) * adj_item              # adj tile
    est += 2 * sub(ti) * lane(e) * 4                      # recv term
    est += 2 * sub(e) * lane(tj) * 4                      # send term (transposed)
    est += 2 * ti * sub(e) * lane(d3) * edge_item         # broadcast We_e
    est += 2 * sub(d1) * lane(e) * 4                      # Wn_agg
    est += 2 * sub(d1) * lane(ti) * 4                     # node base (transposed)
    est += 2 * sub(d1) * lane(ti) * out_item              # output tile
    est += sub(ti) * lane(e) * 4                          # acc scratch
    est += 4 * ti * sub(e) * lane(tj) * 4                 # ea/lin/code/adj-bcast temps
    return est


def graph_interaction_layer(node_code, node_attr, edge_attr, adj, params, *,
                            tile_i=128, tile_j=None, compute_dtype=None,
                            edge_buffer_count=None):
    """Pallas TPU forward of GraphInteractionLayer.

    params (PyTorch Linear layout, (out_features, in_features)):
      'We' (E, D3 + 2*Dni), 'be' (E,)   -- edge_processor
      'Wn' (D1, Dni + E),   'bn' (D1,)  -- node_processor
    compute_dtype: storage / MXU dtype for the dominant edge_attr / adj / We_e
      stream (e.g. jnp.bfloat16 halves HBM traffic; accumulation stays f32).
    edge_buffer_count: optional >2 pipeline depth (pl.Buffered) for the edge/adj
      streams -- mainly useful on v5e if DMA latency stays exposed.
    """
    B, N, D1 = node_code.shape
    D2 = node_attr.shape[-1]
    D3 = edge_attr.shape[-1]
    Dni = D1 + D2
    E = params["We"].shape[0]
    assert params["We"].shape[1] == D3 + 2 * Dni, "We shape mismatch"
    assert params["Wn"].shape == (D1, Dni + E), "Wn shape mismatch"

    # TILE_J=256 keeps per-step DMA/compute chunky; drop to 128 when the per-step
    # (TI, E, TJ) intermediates get large (v7x only has 64 MiB VMEM per core).
    if tile_j is None:
        tile_j = 128 if E >= 64 else 256

    TILE_I = _pick_tile(N, tile_i, 128)   # receiver tile (lanes of the output)
    TILE_J = _pick_tile(N, tile_j, 128)   # sender tile (lanes of the edge stage)

    # v7x megacore balance: keep the parallel extent B*(N/TILE_I) even when cheap.
    if ((B * (N // TILE_I)) % 2 == 1 and TILE_I % 256 == 0
            and N % (TILE_I // 2) == 0):
        TILE_I //= 2

    store_dtype = (jnp.dtype(compute_dtype) if compute_dtype is not None
                   else jnp.dtype(jnp.float32))
    f32 = jnp.float32

    We = params["We"].astype(f32)
    Wn = params["Wn"].astype(f32)
    be = params["be"].astype(f32)
    bn = params["bn"].astype(f32)

    # ---- wrapper-side (XLA) prep: tiny per-node projections + layout plumbing.
    node_info = jnp.concatenate([node_code, node_attr], axis=-1).astype(f32)
    recv = node_info @ We[:, D3:D3 + Dni].T + be                   # (B, N, E)
    send_t = jnp.swapaxes(node_info @ We[:, D3 + Dni:].T, 1, 2)    # (B, E, N)
    nbase_t = jnp.swapaxes(node_info @ Wn[:, :Dni].T + bn, 1, 2)   # (B, D1, N)
    wn_agg = Wn[:, Dni:]                                           # (D1, E)

    # Edge stream: sender dim last (lane-dense tiles, dense VMEM) + optional bf16.
    # TODO(synk): in a full model, produce edge_attr directly as (B, N, D3, N) to
    # avoid this one-off XLA transpose of the largest tensor.
    edge_t = jnp.swapaxes(edge_attr.astype(store_dtype), 2, 3)     # (B, N, D3, N)
    adj_s = adj.astype(store_dtype)                                # (B, N, N)
    we_b = jnp.broadcast_to(We[:, :D3].astype(store_dtype)[None],
                            (TILE_I, E, D3))                       # (TI, E, D3)

    grid = (B, N // TILE_I, N // TILE_J)

    edge_spec_kwargs = {}
    if edge_buffer_count is not None and edge_buffer_count > 2:
        edge_spec_kwargs["pipeline_mode"] = pl.Buffered(edge_buffer_count)

    in_specs = [
        pl.BlockSpec((1, TILE_I, E), lambda b, i, j: (b, i, 0)),            # recv
        pl.BlockSpec((1, E, TILE_J), lambda b, i, j: (b, 0, j)),            # send_t
        pl.BlockSpec((1, TILE_I, D3, TILE_J), lambda b, i, j: (b, i, 0, j),
                     **edge_spec_kwargs),                                    # edge_t
        pl.BlockSpec((1, TILE_I, TILE_J), lambda b, i, j: (b, i, j),
                     **edge_spec_kwargs),                                    # adj
        pl.BlockSpec((TILE_I, E, D3), lambda b, i, j: (0, 0, 0)),           # we_b
        pl.BlockSpec((D1, E), lambda b, i, j: (0, 0)),                      # wn_agg
        pl.BlockSpec((1, D1, TILE_I), lambda b, i, j: (b, 0, i)),           # nbase_t
    ]
    out_spec = pl.BlockSpec((1, D1, TILE_I), lambda b, i, j: (b, 0, i))

    # ---- VMEM budget: include materialized temps, leave 25% headroom (v7x=64MiB).
    try:
        vmem_cap = int(pltpu.get_tpu_info().vmem_capacity_bytes)
    except Exception:
        vmem_cap = 64 * 1024 * 1024          # conservative (v7x-sized) fallback
    vmem_budget = (3 * vmem_cap) // 4

    out_item = jnp.dtype(node_code.dtype).itemsize
    est = _vmem_estimate(TILE_I, TILE_J, D1, D3, E,
                         store_dtype.itemsize, store_dtype.itemsize, out_item)
    vmem_needed = int(1.25 * est)
    if vmem_needed > vmem_budget:
        raise ValueError(
            f"GraphInteractionLayer tiles need ~{vmem_needed >> 20} MiB VMEM but "
            f"only {vmem_budget >> 20} MiB is budgeted; pass smaller tile_i/tile_j "
            f"(or pad N to a multiple of 128 so an aligned tile exists).")

    compiler_params = pltpu.CompilerParams(
        dimension_semantics=("parallel", "parallel", "arbitrary"),
        vmem_limit_bytes=int(min(vmem_budget,
                                 max(vmem_needed, 32 * 1024 * 1024))),
    )

    flops = (2 * B * N * N * D3 * E          # edge matmul
             + 6 * B * N * N * E             # adds / leaky_relu / adj-weighted sum
             + 2 * B * N * E * D1)           # aggregation -> node update
    bytes_accessed = (edge_t.size * store_dtype.itemsize
                      + adj_s.size * store_dtype.itemsize
                      + recv.size * 4 + send_t.size * 4 + nbase_t.size * 4
                      + B * N * D1 * out_item)
    cost = pl.CostEstimate(flops=int(flops), transcendentals=0,
                           bytes_accessed=int(bytes_accessed))

    out_t = pl.pallas_call(
        _gil_kernel,
        out_shape=jax.ShapeDtypeStruct((B, D1, N), node_code.dtype),
        grid_spec=pltpu.PrefetchScalarGridSpec(
            num_scalar_prefetch=0,
            grid=grid,
            in_specs=in_specs,
            out_specs=out_spec,
            scratch_shapes=[pltpu.VMEM((TILE_I, E), jnp.float32)],
        ),
        compiler_params=compiler_params,
        cost_estimate=cost,
    )(recv, send_t, edge_t, adj_s, we_b, wn_agg, nbase_t)

    # lane-dense kernel output (B, D1, N) -> module layout (B, N, D1)
    return jnp.swapaxes(out_t, 1, 2)


def _reference(node_code, node_attr, edge_attr, adj, params):
    """Pure-JAX transcription of the PyTorch forward (for validation)."""
    N = node_code.shape[1]
    node_info = jnp.concatenate([node_code, node_attr], axis=2)
    receiver = jnp.repeat(node_info[:, :, None, :], N, axis=2)
    sender = jnp.repeat(node_info[:, None, :, :], N, axis=1)
    edge_input = jnp.concatenate([edge_attr, receiver, sender], axis=3)
    lin = edge_input @ params["We"].T + params["be"]
    edge_code = jnp.where(lin >= 0, lin, 0.01 * lin)
    edge_agg = jnp.sum(edge_code * adj[:, :, :, None], axis=2)
    node_input = jnp.concatenate([node_info, edge_agg], axis=2)
    return node_input @ params["Wn"].T + params["bn"]


if __name__ == "__main__":
    # Small shapes consistent with the forward (and with __init__ when
    # n_node_attr == n_node_code): node_code B x N x D1, etc.
    B, N = 2, 8
    D1, D2, D3, E = 8, 8, 8, 16
    Dni = D1 + D2

    key = jax.random.PRNGKey(0)
    ks = jax.random.split(key, 8)
    node_code = jax.random.normal(ks[0], (B, N, D1), jnp.float32)
    node_attr = jax.random.normal(ks[1], (B, N, D2), jnp.float32)
    edge_attr = jax.random.normal(ks[2], (B, N, N, D3), jnp.float32)
    adj = (jax.random.uniform(ks[3], (B, N, N)) > 0.5).astype(jnp.float32)

    params = {
        "We": 0.1 * jax.random.normal(ks[4], (E, D3 + 2 * Dni), jnp.float32),
        "be": 0.1 * jax.random.normal(ks[5], (E,), jnp.float32),
        "Wn": 0.1 * jax.random.normal(ks[6], (D1, Dni + E), jnp.float32),
        "bn": 0.1 * jax.random.normal(ks[7], (D1,), jnp.float32),
    }

    ref = _reference(node_code, node_attr, edge_attr, adj, params)

    # f32 path (exact).
    out = graph_interaction_layer(node_code, node_attr, edge_attr, adj, params)
    out = jax.block_until_ready(out)
    assert out.shape == (B, N, D1)
    assert jnp.allclose(out, ref, atol=1e-3, rtol=1e-3), "f32 mismatch vs reference"

    # bf16 storage path (recommended default on v5e/v6e/v7x): halves the
    # dominant edge_attr/adj HBM stream; all accumulation stays f32.
    out_bf16 = graph_interaction_layer(node_code, node_attr, edge_attr, adj,
                                       params, compute_dtype=jnp.bfloat16)
    out_bf16 = jax.block_until_ready(out_bf16)
    assert jnp.allclose(out_bf16, ref, atol=5e-2, rtol=5e-2), "bf16 mismatch vs reference"

    print("KERNEL_OK")
</pallas_src>

<mosaic_0001>
module attributes {stable_mosaic.version = 11 : i64} {
  func.func @_gil_kernel(%arg0: i32, %arg1: i32, %arg2: i32, %arg3: memref<1x8x16xf32, #tpu.memory_space<vmem>>, %arg4: memref<1x16x8xf32, #tpu.memory_space<vmem>>, %arg5: memref<1x8x8x8xf32, #tpu.memory_space<vmem>>, %arg6: memref<1x8x8xf32, #tpu.memory_space<vmem>>, %arg7: memref<8x16x8xf32, #tpu.memory_space<vmem>>, %arg8: memref<8x16xf32, #tpu.memory_space<vmem>>, %arg9: memref<1x8x8xf32, #tpu.memory_space<vmem>>, %arg10: memref<1x8x8xf32, #tpu.memory_space<vmem>>, %arg11: memref<8x16xf32, #tpu.memory_space<vmem>>) attributes {dimension_semantics = [#tpu.dimension_semantics<parallel>, #tpu.dimension_semantics<parallel>, #tpu.dimension_semantics<arbitrary>], iteration_bounds = array<i64: 2, 1, 1>, scalar_prefetch = 0 : i64, scratch_operands = 1 : i64, tpu.core_type = #tpu.core_type<tc>, window_params = [{transform_indices = @transform_0, window_bounds = array<i64: 1, 8, 16>}, {transform_indices = @transform_1, window_bounds = array<i64: 1, 16, 8>}, {transform_indices = @transform_2, window_bounds = array<i64: 1, 8, 8, 8>}, {transform_indices = @transform_3, window_bounds = array<i64: 1, 8, 8>}, {pipeline_mode = #tpu.pipeline_mode<synchronous>, transform_indices = @transform_4, window_bounds = array<i64: 8, 16, 8>}, {pipeline_mode = #tpu.pipeline_mode<synchronous>, transform_indices = @transform_5, window_bounds = array<i64: 8, 16>}, {transform_indices = @transform_6, window_bounds = array<i64: 1, 8, 8>}, {transform_indices = @transform_7, window_bounds = array<i64: 1, 8, 8>}]} {
    %c0_i32 = arith.constant 0 : i32
    %0 = arith.cmpi eq, %arg2, %c0_i32 : i32
    %1 = arith.extui %0 : i1 to i32
    %c0_i32_0 = arith.constant 0 : i32
    %2 = arith.cmpi ne, %1, %c0_i32_0 : i32
    scf.if %2 {
      %cst_24 = arith.constant 0.000000e+00 : f32
      %32 = vector.broadcast %cst_24 : f32 to vector<8x16xf32>
      %c0_25 = arith.constant 0 : index
      %c0_26 = arith.constant 0 : index
      %33 = vector.load %arg11[%c0_25, %c0_26] : memref<8x16xf32, #tpu.memory_space<vmem>>, vector<8x16xf32>
      tpu.vector_store %arg11[%c0_25, %c0_26], %32 {strides = array<i32>} : memref<8x16xf32, #tpu.memory_space<vmem>>, vector<8x16xf32>,
    } else {
    }
    %c0 = arith.constant 0 : index
    %c0_1 = arith.constant 0 : index
    %c0_2 = arith.constant 0 : index
    %3 = vector.load %arg7[%c0, %c0_1, %c0_2] : memref<8x16x8xf32, #tpu.memory_space<vmem>>, vector<8x16x8xf32>
    %c0_3 = arith.constant 0 : index
    %c0_4 = arith.constant 0 : index
    %c0_5 = arith.constant 0 : index
    %c0_6 = arith.constant 0 : index
    %4 = vector.load %arg5[%c0_3, %c0_4, %c0_5, %c0_6] : memref<1x8x8x8xf32, #tpu.memory_space<vmem>>, vector<1x8x8x8xf32>
    %5 = vector.shape_cast %4 : vector<1x8x8x8xf32> to vector<8x8x8xf32>
    %cst = arith.constant dense<0.000000e+00> : vector<8x16x8xf32>
    %6 = tpu.matmul %3, %5, %cst {dimension_numbers = #tpu.dot_dimension_numbers<[2], [1], [1], [2], [0, 0, 0, 1, 1, 2], [0], [0]>} : vector<8x16x8xf32>, vector<8x8x8xf32>, vector<8x16x8xf32> -> vector<8x16x8xf32>
    %c0_7 = arith.constant 0 : index
    %c0_8 = arith.constant 0 : index
    %c0_9 = arith.constant 0 : index
    %7 = vector.load %arg3[%c0_7, %c0_8, %c0_9] : memref<1x8x16xf32, #tpu.memory_space<vmem>>, vector<1x8x16xf32>
    %8 = vector.shape_cast %7 : vector<1x8x16xf32> to vector<8x16xf32>
    %9 = vector.shape_cast %8 : vector<8x16xf32> to vector<8x16x1xf32>
    %10 = vector.broadcast %9 : vector<8x16x1xf32> to vector<8x16x8xf32>
    %11 = arith.addf %6, %10 : vector<8x16x8xf32>
    %c0_10 = arith.constant 0 : index
    %c0_11 = arith.constant 0 : index
    %c0_12 = arith.constant 0 : index
    %12 = vector.load %arg4[%c0_10, %c0_11, %c0_12] : memref<1x16x8xf32, #tpu.memory_space<vmem>>, vector<1x16x8xf32>
    %13 = vector.shape_cast %12 : vector<1x16x8xf32> to vector<16x8xf32>
    %14 = vector.shape_cast %13 : vector<16x8xf32> to vector<1x16x8xf32>
    %15 = vector.broadcast %14 : vector<1x16x8xf32> to vector<8x16x8xf32>
    %16 = arith.addf %11, %15 : vector<8x16x8xf32>
    %cst_13 = arith.constant 0.00999999977 : f32
    %17 = vector.broadcast %cst_13 : f32 to vector<8x16x8xf32>
    %18 = arith.mulf %17, %16 : vector<8x16x8xf32>
    %19 = arith.maximumf %16, %18 : vector<8x16x8xf32>
    %c0_14 = arith.constant 0 : index
    %c0_15 = arith.constant 0 : index
    %c0_16 = arith.constant 0 : index
    %20 = vector.load %arg6[%c0_14, %c0_15, %c0_16] : memref<1x8x8xf32, #tpu.memory_space<vmem>>, vector<1x8x8xf32>
    %21 = vector.shape_cast %20 : vector<1x8x8xf32> to vector<8x8xf32>
    %c0_17 = arith.constant 0 : index
    %c0_18 = arith.constant 0 : index
    %22 = vector.load %arg11[%c0_17, %c0_18] : memref<8x16xf32, #tpu.memory_space<vmem>>, vector<8x16xf32>
    %23 = vector.shape_cast %21 : vector<8x8xf32> to vector<8x1x8xf32>
    %24 = vector.broadcast %23 : vector<8x1x8xf32> to vector<8x16x8xf32>
    %25 = arith.mulf %19, %24 : vector<8x16x8xf32>
    %cst_19 = arith.constant dense<0.000000e+00> : vector<8x16xf32>
    %26 = vector.multi_reduction <add>, %25, %cst_19 [2] : vector<8x16x8xf32> to vector<8x16xf32>
    %27 = arith.addf %22, %26 : vector<8x16xf32>
    %c0_20 = arith.constant 0 : index
    %c0_21 = arith.constant 0 : index
    %28 = vector.load %arg11[%c0_20, %c0_21] : memref<8x16xf32, #tpu.memory_space<vmem>>, vector<8x16xf32>
    tpu.vector_store %arg11[%c0_20, %c0_21], %27 {strides = array<i32>} : memref<8x16xf32, #tpu.memory_space<vmem>>, vector<8x16xf32>,
    %c0_i32_22 = arith.constant 0 : i32
    %29 = arith.cmpi eq, %arg2, %c0_i32_22 : i32
    %30 = arith.extui %29 : i1 to i32
    %c0_i32_23 = arith.constant 0 : i32
    %31 = arith.cmpi ne, %30, %c0_i32_23 : i32
    scf.if %31 {
      %c0_24 = arith.constant 0 : index
      %c0_25 = arith.constant 0 : index
      %32 = vector.load %arg8[%c0_24, %c0_25] : memref<8x16xf32, #tpu.memory_space<vmem>>, vector<8x16xf32>
      %c0_26 = arith.constant 0 : index
      %c0_27 = arith.constant 0 : index
      %33 = vector.load %arg11[%c0_26, %c0_27] : memref<8x16xf32, #tpu.memory_space<vmem>>, vector<8x16xf32>
      %cst_28 = arith.constant dense<0.000000e+00> : vector<8x8xf32>
      %34 = tpu.matmul %32, %33, %cst_28 {dimension_numbers = #tpu.dot_dimension_numbers<[1], [1], [0], [0], [0, 0, 1, 0], [], []>} : vector<8x16xf32>, vector<8x16xf32>, vector<8x8xf32> -> vector<8x8xf32>
      %c0_29 = arith.constant 0 : index
      %c0_30 = arith.constant 0 : index
      %c0_31 = arith.constant 0 : index
      %35 = vector.load %arg9[%c0_29, %c0_30, %c0_31] : memref<1x8x8xf32, #tpu.memory_space<vmem>>, vector<1x8x8xf32>
      %36 = vector.shape_cast %35 : vector<1x8x8xf32> to vector<8x8xf32>
      %37 = arith.addf %34, %36 : vector<8x8xf32>
      %c0_32 = arith.constant 0 : index
      %c0_33 = arith.constant 0 : index
      %c0_34 = arith.constant 0 : index
      %38 = vector.load %arg10[%c0_32, %c0_33, %c0_34] : memref<1x8x8xf32, #tpu.memory_space<vmem>>, vector<1x8x8xf32>
      %39 = vector.shape_cast %38 : vector<1x8x8xf32> to vector<8x8xf32>
      %40 = vector.shape_cast %37 : vector<8x8xf32> to vector<1x8x8xf32>
      tpu.vector_store %arg10[%c0_32, %c0_33, %c0_34], %40 {strides = array<i32>} : memref<1x8x8xf32, #tpu.memory_space<vmem>>, vector<1x8x8xf32>,
    } else {
    }
    return
  }
  func.func @transform_0(%arg0: i32, %arg1: i32, %arg2: i32) -> (i32, i32, i32) {
    %c0_i32 = arith.constant 0 : i32
    %c0_i32_0 = arith.constant 0 : i32
    return %arg0, %arg1, %c0_i32 : i32, i32, i32
  }
  func.func @transform_1(%arg0: i32, %arg1: i32, %arg2: i32) -> (i32, i32, i32) {
    %c0_i32 = arith.constant 0 : i32
    %c0_i32_0 = arith.constant 0 : i32
    return %arg0, %c0_i32, %arg2 : i32, i32, i32
  }
  func.func @transform_2(%arg0: i32, %arg1: i32, %arg2: i32) -> (i32, i32, i32, i32) {
    %c0_i32 = arith.constant 0 : i32
    %c0_i32_0 = arith.constant 0 : i32
    return %arg0, %arg1, %c0_i32, %arg2 : i32, i32, i32, i32
  }
  func.func @transform_3(%arg0: i32, %arg1: i32, %arg2: i32) -> (i32, i32, i32) {
    %c0_i32 = arith.constant 0 : i32
    return %arg0, %arg1, %arg2 : i32, i32, i32
  }
  func.func @transform_4(%arg0: i32, %arg1: i32, %arg2: i32) -> (i32, i32, i32) {
    %c0_i32 = arith.constant 0 : i32
    %c0_i32_0 = arith.constant 0 : i32
    %c0_i32_1 = arith.constant 0 : i32
    %c0_i32_2 = arith.constant 0 : i32
    return %c0_i32, %c0_i32_0, %c0_i32_1 : i32, i32, i32
  }
  func.func @transform_5(%arg0: i32, %arg1: i32, %arg2: i32) -> (i32, i32) {
    %c0_i32 = arith.constant 0 : i32
    %c0_i32_0 = arith.constant 0 : i32
    %c0_i32_1 = arith.constant 0 : i32
    return %c0_i32, %c0_i32_0 : i32, i32
  }
  func.func @transform_6(%arg0: i32, %arg1: i32, %arg2: i32) -> (i32, i32, i32) {
    %c0_i32 = arith.constant 0 : i32
    %c0_i32_0 = arith.constant 0 : i32
    return %arg0, %c0_i32, %arg1 : i32, i32, i32
  }
  func.func @transform_7(%arg0: i32, %arg1: i32, %arg2: i32) -> (i32, i32, i32) {
    %c0_i32 = arith.constant 0 : i32
    %c0_i32_0 = arith.constant 0 : i32
    return %arg0, %c0_i32, %arg1 : i32, i32, i32
  }
}

</mosaic_0001>

<bundles_post_ra>
// kernel: tpu_custom_call.1
= control target key start
LH: loop header
LB: loop body
LE: loop exit
PB: predicated region body
PF: predicated region fallthrough
CT: control target
= control target key end

     0   :  { %s2379_s0 = inlined_call_operand.vmem [shape: f32[2,8,16], index: 0, kind: input, shape index: {}]   ;;  %s2380_s1 = inlined_call_operand.vmem [shape: f32[2,16,8], index: 1, kind: input, shape index: {}]   ;;  %s2381_s2 = inlined_call_operand.vmem [shape: f32[2,8,8,8], index: 2, kind: input, shape index: {}]   ;;  %s2382_s3 = inlined_call_operand.vmem [shape: f32[2,8,8], index: 3, kind: input, shape index: {}]   ;;  %s2383_s4 = inlined_call_operand.vmem [shape: f32[8,16,8], index: 4, kind: input, shape index: {}]   ;;  %s2384_s5 = inlined_call_operand.vmem [shape: f32[8,16], index: 5, kind: input, shape index: {}]   ;;  %s2385_s6 = inlined_call_operand.vmem [shape: f32[2,8,8], index: 6, kind: input, shape index: {}]   ;;  %s2386_s7 = inlined_call_operand.hbm [shape: f32[2,8,8], index: 7, kind: output, shape index: {}]  }
   0x1   :  { %2387 = sst [smem:[#allocation6_spill]] %s2379_s0 }
   0x2   :  { %12 = vsyncpa [#allocation4], 0 }
   0x3   :  { %14 = vsyncpa [#allocation4 + $0x1], 0  ;;  %s2068_s24 = smov 0   ;;  %s2070_s25 = smov 0  }
   0x4   :  { %s2072_s26 = smov 0   ;;  %s2074_s27 = smov 0  }
   0x5   :  { %s2076_s28 = smov 0   ;;  %s2078_s29 = smov 0  }
   0x6 LB: > { %s1779_s30 = sadd.s32 4294967295, %s2022_s29   ;;  %s1780_s8 = sadd.s32 4294967294, %s2022_s29   ;;  %s2022_s29 = sphi %s2078_s29, %s20_s29   ;;  %s2018_s28 = sphi %s2076_s28, %s2395_s28   ;;  %s2014_s27 = sphi %s2074_s27, %s2394_s27   ;;  %s2010_s26 = sphi %s2072_s26, %s2393_s26   ;;  %s2006_s25 = sphi %s2070_s25, %s2392_s25   ;;  %s2002_s24 = sphi %s2068_s24, %s2391_s24  }
   0x7   : > { %s39_s9 = sadd.s32 1, %s2018_s28  ;;  %s234_s10 = sadd.s32 1, %s2010_s26 }
   0x8   : > { %p41_p0 = scmp.ge.s32.totalorder %s39_s9, 2  ;;  %p244_p1 = scmp.ne.s32.totalorder %s2010_s26, %s2006_s25 }
   0x9   : > { %p245_p2 = scmp.eq.s32.totalorder %s1779_s30, 1  ;;  %p250_p3 = scmp.ne.s32.totalorder %s2006_s25, %s2002_s24 }
   0xa   : > { %s2397_s9 = smov (%p41_p0, %s39_s9), 0  ;;  %p251_p5 = scmp.eq.s32.totalorder %s1780_s8, 1 }
   0xb   : > { %p2108_p4 = por %p245_p2, %p244_p1  ;;  %s229_s12 = ssub.s32 %s2018_s28, %s2397_s9 }
   0xc   : > { %p1783_p6 = scmp.ge.s32.totalorder %s2022_s29, 1  ;;  %p232_p7 = scmp.eq.s32.totalorder %s229_s12, 0 }
   0xd   : > { %p2115_p8 = por %p251_p5, %p250_p3  ;;  %p335_p9 = scmp.lt.s32.totalorder %s2022_s29, 3 }
   0xe   : > { %s2121_s14 = scalar_select %p232_p7, %s2010_s26, %s234_s10  }
   0xf   : > { %p336_p10 = pnand %p1783_p6, %p335_p9 }
  0x10   : > { %p406_p11 = scmp.lt.s32.totalorder (!%p336_p10), %s2014_s27, 1  ;;  %s2390_s0 = sld [smem:[#allocation6_spill]] (!%p336_p10) }
  0x11   : > { %339 = sbr.rel (%p336_p10) target bundleno = 628 (0x274), region = 48  ;;  %s403_s22 = sand.u32 (!%p336_p10), 1, %s2006_s25  }
  0x12   : > { %s1619_s21 = scalar_lea.sflag (!%p336_p10), [#allocation4], %s403_s22 }
  0x16   : > { %v457_v0 = vld [vmem:[%s2383_s4] sm:$0xff]  ;;  %vm570_vm0 = vcmask 64512   ;;  %v459_v1 = vld [vmem:[%s2383_s4 + $0x10] sm:$0xff]  ;;  %s2133_s19 = scalar_select %p406_p11, %s2014_s27, 1  ;;  %v458_v2 = vld [vmem:[%s2383_s4 + $0x8] sm:$0xff]  ;;  %v482_v6 = vlaneseq  ;;  %vm455_vm1 = vcmask 130048  }
  0x17   : > { %1844 = vmatprep.mubr.msk.f32.mxu0 %vm570_vm0, %v457_v0  ;;  %1849 = vmatprep.mubr.msk.f32.mxu1 %vm570_vm0, %v459_v1  ;;  %v460_v5 = vld [vmem:[%s2383_s4 + $0x18] sm:$0xff]  ;;  %v461_v8 = vld [vmem:[%s2383_s4 + $0x20] sm:$0xff]  ;;  %v463_v10 = vld [vmem:[%s2383_s4 + $0x30] sm:$0xff]  ;;  %v2024_v45 = vmov 1966171168   ;;  %vm2026_vm2 = vmmov 0  }
  0x18   : > { %s1815_s20 = sshll.u32 %s2133_s19, 6  ;;  %v462_v11 = vld [vmem:[%s2383_s4 + $0x28] sm:$0xff]  ;;  %v464_v12 = vld [vmem:[%s2383_s4 + $0x38] sm:$0xff]  ;;  %v2170_v13 = vshrl.u32 %v482_v6, 7  ;;  %v465_v15 = vld [vmem:[%s2383_s4 + $0x40] sm:$0xff]  ;;  %v1274_v46 = vunpack.c.l.s4 %v2024_v45  ;;  %s1814_s12 = sshll.u32 %s2133_s19, 4 }
  0x19   : > { %s2139_s23 = scalar_lea.vmem %s2381_s2, %s1815_s20  ;;  %s2160_s20 = sshll.u32 %s2133_s19, 3  ;;  %v467_v17 = vld [vmem:[%s2383_s4 + $0x50] sm:$0xff]  ;;  %v466_v18 = vld [vmem:[%s2383_s4 + $0x48] sm:$0xff]  ;;  %v468_v19 = vld [vmem:[%s2383_s4 + $0x58] sm:$0xff]  ;;  %vm1452_vm3 = vcmask 130112   ;;  %vm1517_vm4 = vcmask 1041409  }
  0x1a   : > { %v473_v3 = vld [vmem:[%s2139_s23] sm:$0xff]  ;;  %v474_v4 = vld [vmem:[%s2139_s23 + $0x8] sm:$0xff]  ;;  %v475_v7 = vld [vmem:[%s2139_s23 + $0x10] sm:$0xff]  ;;  %s412_s17 = scalar_lea.vmem %s2390_s0, %s2160_s20  ;;  %v495_v20 = vsub.s32 1, %v2170_v13  ;;  %v2196_v21 = vsub.s32 0, %v2170_v13  ;;  %v506_v31 = vsub.s32 2, %v2170_v13  ;;  %v1275_v48 = vunpack.c.0.s8 %v1274_v46  ;;  %s443_s10 = scalar_lea.vmem %s2382_s3, %s2160_s20 }
  0x1b   : > { %1842 = vmatprep.subr.mxu0 %v473_v3  ;;  %1847 = vmatprep.subr.mxu1 %v474_v4  ;;  %v476_v9 = vld [vmem:[%s2139_s23 + $0x18] sm:$0xff]  ;;  %v477_v14 = vld [vmem:[%s2139_s23 + $0x20] sm:$0xff]  ;;  %v478_v16 = vld [vmem:[%s2139_s23 + $0x28] sm:$0xff]  ;;  %v517_v33 = vsub.s32 3, %v2170_v13  ;;  %v528_v35 = vsub.s32 4, %v2170_v13  ;;  %v539_v37 = vsub.s32 5, %v2170_v13  ;;  %s420_s18 = scalar_lea.vmem %s2380_s1, %s1814_s12  ;;  %s450_s8 = scalar_lea.vmem %s2385_s6, %s2160_s20 }
  0x1c   : > { %1843 = vmatpush3.msra.mxu0 %v473_v3  ;;  %1848 = vmatpush3.msra.mxu1 %v474_v4  ;;  %v479_v22 = vld [vmem:[%s2139_s23 + $0x30] sm:$0xff]  ;;  %v469_v23 = vld [vmem:[%s2383_s4 + $0x60] sm:$0xff]  ;;  %v480_v25 = vld [vmem:[%s2139_s23 + $0x38] sm:$0xff]  ;;  %v550_v39 = vsub.s32 6, %v2170_v13  ;;  %v561_v41 = vsub.s32 7, %v2170_v13  ;;  %v2231_v51 = vsub.s32 %v1275_v48, %v2170_v13  ;;  %vm1519_vm5 = vcmask 1042434  }
  0x1d   : > { %1845 = vmatmul.mubr.msk.f32.vlgmr.msra.gmra.mxu0 %vm570_vm0, %v458_v2  ;;  %1850 = vmatmul.mubr.msk.f32.vlgmr.msra.gmra.mxu1 %vm570_vm0, %v460_v5  ;;  %v481_v24 = vld [vmem:[%s412_s17] sm:$0xff]  ;;  %v471_v26 = vld [vmem:[%s2383_s4 + $0x70] sm:$0xff]  ;;  %v470_v27 = vld [vmem:[%s2383_s4 + $0x68] sm:$0xff]  ;;  %vm1521_vm6 = vcmask 1043459   ;;  %vm1523_vm7 = vcmask 1044484   ;;  %vm1525_vm8 = vcmask 1045509  }
  0x1e   : > { %1852 = vmatprep.subr.mxu0 %v475_v7  ;;  %1854 = vmatprep.mubr.msk.f32.mxu0 %vm570_vm0, %v461_v8  ;;  %v472_v28 = vld [vmem:[%s2383_s4 + $0x78] sm:$0xff]  ;;  %v496_v29 = vrot.slane %v481_v24, %v495_v20  ;;  %v485_v30 = vrot.slane %v481_v24, %v2196_v21  ;;  %v507_v32 = vrot.slane %v481_v24, %v506_v31  ;;  %v1269_v53 = vld [vmem:[%s443_s10] sm:$0xff]  ;;  %v2241_v63 = vld [vmem:[%s420_s18 + $0x8] sm:$0xff]  ;;  %vm1527_vm9 = vcmask 1046534   ;;  %s1784_s17 = sshll.u32 %s403_s22, 3  ;;  %s1811_s10 = sshll.u32 %s2014_s27, 7 }
  0x1f   : > { %1853 = vmatpush3.msra.mxu0 %v475_v7  ;;  %1857 = vmatprep.subr.mxu1 %v476_v9  ;;  %v518_v34 = vrot.slane %v481_v24, %v517_v33  ;;  %v529_v36 = vrot.slane %v481_v24, %v528_v35  ;;  %v540_v38 = vrot.slane %v481_v24, %v539_v37  ;;  %v2244_v7 = vld [vmem:[%s420_s18] sm:$0xff]  ;;  %vm1529_vm10 = vcmask 1047559   ;;  %s405_s12 = scalar_lea.vmem [#allocation3], %s1784_s17  ;;  %s2338_s19 = scalar_lea.hbm %s2386_s7, %s1811_s10 }
  0x20   : > { %1858 = vmatpush3.msra.mxu1 %v476_v9  ;;  %1859 = vmatprep.mubr.msk.f32.mxu1 %vm570_vm0, %v463_v10  ;;  %v551_v40 = vrot.slane %v481_v24, %v550_v39  ;;  %v562_v42 = vrot.slane %v481_v24, %v561_v41  ;;  %v1279_v54 = vrot.slane %v1269_v53, %v2231_v51  ;;  %s1633_s15 = sshll.u32 %s405_s12, 4  ;;  %s2027_s27 = smov [#allocation3]   ;;  %s1634_s15 = int_to_ptr.vmem [resolvable:$true] %s1633_s15 }
  0x21   : > { %1855 = vmatmul.mubr.msk.f32.vlgmr.msra.gmra.mxu0 %vm570_vm0, %v462_v11  ;;  %1860 = vmatmul.mubr.msk.f32.vlgmr.msra.gmra.mxu1 %vm570_vm0, %v464_v12  ;;  %v1272_v59 = vcombine.high %v1269_v53, %v1269_v53  ;;  %s1946_s0 = scalar_lea.vmem %s1634_s15, 128  ;;  %s1950_s20 = sshll.u32 %s2027_s27, 4  ;;  %s1951_s20 = int_to_ptr.vmem [resolvable:$false] %s1950_s20 }
  0x22   : > { %1862 = vmatprep.subr.mxu0 %v477_v14  ;;  %1864 = vmatprep.mubr.msk.f32.mxu0 %vm570_vm0, %v465_v15  ;;  %v1287_v57 = vcombine.high %v1279_v54, %v1279_v54  ;;  %v1295_v58 = vrot.slane %v1279_v54, %v2231_v51  ;;  %p1947_p12 = scmp.ne.s32.totalorder %s1634_s15, %s1946_s0  ;;  %s1952_s17 = scalar_lea.vmem %s1951_s20, 256 }
  0x23   : > { %1863 = vmatpush3.msra.mxu0 %v477_v14  ;;  %1867 = vmatprep.subr.mxu1 %v478_v16  ;;  %v1286_v10 = vrot.slane %v1272_v59, %v2231_v51  ;;  %p1953_p1 = scmp.lt.s32.totalorder %s1634_s15, %s1951_s20  ;;  %p1954_p2 = scmp.lt.s32.totalorder %s1952_s17, %s1946_s0 }
  0x24   : > { %1868 = vmatpush3.msra.mxu1 %v478_v16  ;;  %1869 = vmatprep.mubr.msk.f32.mxu1 %vm570_vm0, %v467_v17  ;;  %v1309_v0 = vrot.slane %v1287_v57, %v2231_v51  ;;  %v1317_v1 = vcombine.high %v1295_v58, %v1295_v58  ;;  %p1948_p13 = pnand %p1947_p12, %p2108_p4 }
  0x25   : > { %1865 = vmatmul.mubr.msk.f32.vlgmr.msra.gmra.mxu0 %vm570_vm0, %v466_v18  ;;  %1870 = vmatmul.mubr.msk.f32.vlgmr.msra.gmra.mxu1 %vm570_vm0, %v468_v19  ;;  %v1324_v19 = vrot.slane %v1295_v58, %v2196_v21  ;;  %v1288_v37 = vcombine.high %v1286_v10, %v1286_v10  ;;  %p1955_p3 = por %p1954_p2, %p1953_p1 }
  0x26   : > { %1872 = vmatprep.subr.mxu0 %v479_v22  ;;  %1874 = vmatprep.mubr.msk.f32.mxu0 %vm570_vm0, %v469_v23  ;;  %v1319_v9 = vcombine.high %v1309_v0, %v1309_v0  ;;  %v1328_v18 = vrot.slane %v1309_v0, %v2196_v21  ;;  %v2252_v20 = vrot.slane %v1317_v1, %v2196_v21  ;;  %p1949_p0 = pneg %p1948_p13 }
  0x27   : > { %1873 = vmatpush3.msra.mxu0 %v479_v22  ;;  %1877 = vmatprep.subr.mxu1 %v480_v25 }
  0x28   : > { %1878 = vmatpush3.msra.mxu1 %v480_v25  ;;  %1879 = vmatprep.mubr.msk.f32.mxu1 %vm570_vm0, %v471_v26  ;;  %v2257_v31 = vrot.slane %v1319_v9, %v2196_v21  ;;  %p1956_p5 = pnand %p1955_p3, %p1949_p0 }
  0x29   : > { %1875 = vmatmul.mubr.msk.f32.vlgmr.msra.gmra.mxu0 %vm570_vm0, %v470_v27  ;;  %1880 = vmatmul.mubr.msk.f32.vlgmr.msra.gmra.mxu1 %vm570_vm0, %v472_v28 }
  0x2a   : > { %498 = vbcast.lane.b32.xlu1 %v496_v29, 256  ;;  %487 = vbcast.lane.b32.xlu0 %v485_v30, 256 }
  0x2e   : > { %502 = vbcast.lane.b32.xlu1 %v496_v29, 264  ;;  %491 = vbcast.lane.b32.xlu0 %v485_v30, 264 }
  0x32   : > { %513 = vbcast.lane.b32.xlu1 %v507_v32, 264  ;;  %509 = vbcast.lane.b32.xlu0 %v507_v32, 256  ;;  %v2260_v32 = vrot.slane %v1286_v10, %v2231_v51 }
  0x34   : > { %v2270_v53 = vrot.slane %v2260_v32, %v2196_v21 }
  0x36   : > { %524 = vbcast.lane.b32.xlu1 %v518_v34, 264  ;;  %520 = vbcast.lane.b32.xlu0 %v518_v34, 256 }
  0x3a   : > { %535 = vbcast.lane.b32.xlu1 %v529_v36, 264  ;;  %531 = vbcast.lane.b32.xlu0 %v529_v36, 256 }
  0x3e   : > { %546 = vbcast.lane.b32.xlu1 %v540_v38, 264  ;;  %542 = vbcast.lane.b32.xlu0 %v540_v38, 256 }
  0x42   : > { %557 = vbcast.lane.b32.xlu1 %v551_v40, 264  ;;  %553 = vbcast.lane.b32.xlu0 %v551_v40, 256 }
  0x46   : > { %568 = vbcast.lane.b32.xlu1 %v562_v42, 264  ;;  %564 = vbcast.lane.b32.xlu0 %v562_v42, 256 }
  0x9c   : > { %v488_v43 = vpop.permute.xlu0 %487  ;;  %v499_v44 = vpop.permute.xlu1 %498 }
  0xa0   : > { %v492_v47 = vpop.permute.xlu0 %491  ;;  %v503_v49 = vpop.permute.xlu1 %502 }
  0xa4   : > { %v510_v50 = vpop.permute.xlu0 %509  ;;  %v514_v52 = vpop.permute.xlu1 %513 }
  0xa8   : > { %v521_v55 = vpop.permute.xlu0 %520  ;;  %v525_v56 = vpop.permute.xlu1 %524 }
  0xac   : > { %v2239_v60 = vpop.permute.xlu0 %531  ;;  %v536_v4 = vpop.permute.xlu1 %535 }
  0xb0   : > { %v543_v26 = vpop.permute.xlu0 %542  ;;  %v547_v36 = vpop.permute.xlu1 %546 }
  0xb4   : > { %v554_v59 = vpop.permute.xlu0 %553  ;;  %v558_v9 = vpop.permute.xlu1 %557 }
  0xdd   : > { %v1846_v61 = vpop.f32.mrf.mxu0  ;;  %v1851_v62 = vpop.f32.mrf.mxu1 }
  0xde   : > { %v730_v2 = vadd.f32 %v1851_v62, %v503_v49  ;;  %v649_v3 = vadd.f32 %v1846_v61, %v492_v47 }
  0xdf   : > { %v643_v5 = vpop.f32.mrf.mxu0  ;;  %v724_v8 = vpop.f32.mrf.mxu1 }
  0xe0   : > { %v1224_v11 = vadd.f32 %v2241_v63, %v730_v2  ;;  %v1222_v12 = vadd.f32 %v2241_v63, %v649_v3  ;;  %v644_v14 = vadd.f32 %v643_v5, %v488_v43  ;;  %v725_v15 = vadd.f32 %v724_v8, %v499_v44 }
  0xe1   : > { %v1856_v16 = vpop.f32.mrf.mxu0  ;;  %v1861_v17 = vpop.f32.mrf.mxu1  ;;  %v1316_v2 = vrot.slane %v1288_v37, %v2231_v51 }
  0xe2   : > { %v1240_v22 = vmul.f32 0.01, %v1224_v11  ;;  %v1238_v23 = vmul.f32 0.01, %v1222_v12  ;;  %v1221_v24 = vadd.f32 %v2244_v7, %v644_v14  ;;  %v1223_v25 = vadd.f32 %v2244_v7, %v725_v15 }
  0xe3   : > { %v805_v27 = vpop.f32.mrf.mxu0  ;;  %v811_v28 = vadd.f32 %v1856_v16, %v514_v52  ;;  %v886_v29 = vpop.f32.mrf.mxu1  ;;  %v892_v30 = vadd.f32 %v1861_v17, %v525_v56 }
  0xe4   : > { %v1237_v33 = vmul.f32 0.01, %v1221_v24  ;;  %v806_v34 = vadd.f32 %v805_v27, %v510_v50  ;;  %v1256_v35 = vmax.f32 %v1224_v11, %v1240_v22  ;;  %v1239_v38 = vmul.f32 0.01, %v1223_v25 }
  0xe5   : > { %v1226_v39 = vadd.f32 %v2241_v63, %v811_v28  ;;  %v1254_v40 = vmax.f32 %v1222_v12, %v1238_v23  ;;  %v887_v41 = vadd.f32 %v886_v29, %v521_v55  ;;  %v1866_v42 = vpop.f32.mrf.mxu0  ;;  %v1871_v43 = vpop.f32.mrf.mxu1  ;;  %v2265_v45 = vadd.f32 %v2241_v63, %v892_v30 }
  0xe6   : > { %v1225_v44 = vadd.f32 %v2244_v7, %v806_v34  ;;  %v1364_v46 = vmul.f32 %v1328_v18, %v1256_v35  ;;  %v1253_v47 = vmax.f32 %v1221_v24, %v1237_v33  ;;  %v973_v52 = vadd.f32 %v1866_v42, %v536_v4  ;;  %v565_v30 = vpop.permute.xlu0 %564 }
  0xe7   : > { %v1362_v48 = vmul.f32 %v1324_v19, %v1254_v40  ;;  %v1227_v49 = vadd.f32 %v2244_v7, %v887_v41  ;;  %v967_v50 = vpop.f32.mrf.mxu0  ;;  %v1242_v54 = vmul.f32 0.01, %v1226_v39  ;;  %v1048_v58 = vpop.f32.mrf.mxu1  ;;  %v1244_v3 = vmul.f32 0.01, %v2265_v45 }
  0xe8   : > { %v1241_v55 = vmul.f32 0.01, %v1225_v44  ;;  %v1386_v56 = vsel %vm570_vm0, %v1364_v46, 0.0  ;;  %v1361_v57 = vmul.f32 %v1324_v19, %v1253_v47  ;;  %v968_v0 = vadd.f32 %v967_v50, %v2239_v60 }
  0xe9   : > { %1387 = vadd.xlane.f32.xlu0 %v1386_v56  ;;  %v1380_v61 = vsel %vm570_vm0, %v1362_v48, 0.0  ;;  %v1243_v62 = vmul.f32 0.01, %v1227_v49  ;;  %v1876_v1 = vpop.f32.mrf.mxu0  ;;  %v1054_v4 = vadd.f32 %v1871_v43, %v547_v36  ;;  %v1255_v5 = vmax.f32 %v1223_v25, %v1239_v38  ;;  %v1881_v10 = vpop.f32.mrf.mxu1 }
  0xea   : > { %1381 = vadd.xlane.f32.xlu1 %v1380_v61  ;;  %v1257_v8 = vmax.f32 %v1225_v44, %v1241_v55  ;;  %v1230_v11 = vadd.f32 %v2241_v63, %v973_v52  ;;  %v1377_v12 = vsel %vm570_vm0, %v1361_v57, 0.0  ;;  %v1229_v14 = vadd.f32 %v2244_v7, %v968_v0 }
  0xeb   : > { %v1049_v15 = vadd.f32 %v1048_v58, %v543_v26  ;;  %v1363_v16 = vmul.f32 %v1328_v18, %v1255_v5  ;;  %v1129_v17 = vpop.f32.mrf.mxu0  ;;  %v1258_v51 = vmax.f32 %v1226_v39, %v1242_v54  ;;  %v1259_v19 = vmax.f32 %v1227_v49, %v1243_v62  ;;  %v1210_v29 = vpop.f32.mrf.mxu1 }
  0xec   : > { %v1365_v60 = vmul.f32 %v2252_v20, %v1257_v8  ;;  %v1245_v22 = vmul.f32 0.01, %v1229_v14  ;;  %v1344_v24 = vrot.slane %v1316_v2, %v2196_v21  ;;  %v1318_v25 = vcombine.high %v2260_v32, %v2260_v32  ;;  %v569_v32 = vpop.permute.xlu1 %568 }
  0xed   : > { %1378 = vadd.xlane.f32.xlu0 %v1377_v12  ;;  %v1231_v23 = vadd.f32 %v2244_v7, %v1049_v15  ;;  %v1232_v27 = vadd.f32 %v2241_v63, %v1054_v4  ;;  %v1135_v26 = vadd.f32 %v1876_v1, %v558_v9  ;;  %v1367_v18 = vmul.f32 %v2257_v31, %v1259_v19 }
  0xee   : > { %v1389_v28 = vsel %vm570_vm0, %v1365_v60, 0.0  ;;  %v1246_v33 = vmul.f32 0.01, %v1230_v11  ;;  %v1383_v34 = vsel %vm570_vm0, %v1363_v16, 0.0  ;;  %v1130_v36 = vadd.f32 %v1129_v17, %v554_v59 }
  0xef   : > { %1390 = vadd.xlane.f32.xlu1 %v1389_v28  ;;  %v1247_v35 = vmul.f32 0.01, %v1231_v23  ;;  %v1366_v37 = vmul.f32 %v2252_v20, %v1258_v51  ;;  %v1395_v38 = vsel %vm570_vm0, %v1367_v18, 0.0  ;;  %v1260_v39 = vmax.f32 %v2265_v45, %v1244_v3 }
  0xf0   : > { %v1261_v40 = vmax.f32 %v1229_v14, %v1245_v22  ;;  %v1233_v41 = vadd.f32 %v2244_v7, %v1130_v36  ;;  %v1211_v42 = vadd.f32 %v1210_v29, %v565_v30  ;;  %v1348_v43 = vrot.slane %v1318_v25, %v2196_v21 }
  0xf1   : > { %1384 = vadd.xlane.f32.xlu0 %v1383_v34  ;;  %v1320_v44 = vcombine.high %v1316_v2, %v1316_v2  ;;  %v1248_v46 = vmul.f32 0.01, %v1232_v27  ;;  %v1234_v47 = vadd.f32 %v2241_v63, %v1135_v26  ;;  %v1263_v49 = vmax.f32 %v1231_v23, %v1247_v35 }
  0xf2   : > { %v1369_v48 = vmul.f32 %v2270_v53, %v1261_v40  ;;  %v1249_v20 = vmul.f32 0.01, %v1233_v41  ;;  %v1216_v50 = vadd.f32 %v1881_v10, %v569_v32  ;;  %v1235_v52 = vadd.f32 %v2244_v7, %v1211_v42 }
  0xf3   : > { %1396 = vadd.xlane.f32.xlu1 %v1395_v38  ;;  %v1262_v45 = vmax.f32 %v1230_v11, %v1246_v33  ;;  %v1392_v54 = vsel %vm570_vm0, %v1366_v37, 0.0  ;;  %v1368_v55 = vmul.f32 %v2257_v31, %v1260_v39  ;;  %v1371_v57 = vmul.f32 %v1344_v24, %v1263_v49 }
  0xf4   : > { %v1401_v56 = vsel %vm570_vm0, %v1369_v48, 0.0  ;;  %v1251_v58 = vmul.f32 0.01, %v1235_v52  ;;  %v1265_v59 = vmax.f32 %v1233_v41, %v1249_v20  ;;  %v1352_v61 = vrot.slane %v1320_v44, %v2196_v21 }
  0xf5   : > { %1393 = vadd.xlane.f32.xlu0 %v1392_v54  ;;  %v1250_v62 = vmul.f32 0.01, %v1234_v47  ;;  %v1236_v0 = vadd.f32 %v2241_v63, %v1216_v50  ;;  %v1370_v1 = vmul.f32 %v2270_v53, %v1262_v45  ;;  %v1264_v7 = vmax.f32 %v1232_v27, %v1248_v46 }
  0xf6   : > { %v1398_v2 = vsel %vm570_vm0, %v1368_v55, 0.0  ;;  %v1407_v3 = vsel %vm570_vm0, %v1371_v57, 0.0  ;;  %v1373_v31 = vmul.f32 %v1348_v43, %v1265_v59  ;;  %v1267_v4 = vmax.f32 %v1235_v52, %v1251_v58 }
  0xf7   : > { %1402 = vadd.xlane.f32.xlu1 %v1401_v56  ;;  %v1252_v5 = vmul.f32 0.01, %v1236_v0  ;;  %v1372_v8 = vmul.f32 %v1344_v24, %v1264_v7  ;;  %v1404_v9 = vsel %vm570_vm0, %v1370_v1, 0.0  ;;  %v1266_v10 = vmax.f32 %v1234_v47, %v1250_v62 }
  0xf8   : > { %v1413_v21 = vsel %vm570_vm0, %v1373_v31, 0.0  ;;  %v1375_v63 = vmul.f32 %v1352_v61, %v1267_v4  ;;  %v2025_v17 = vmov 0.0   ;;  %v1442_v28 = vand.u32 127, %v482_v6 }
  0xf9   : > { %1399 = vadd.xlane.f32.xlu0 %v1398_v2  ;;  %v1410_v53 = vsel %vm570_vm0, %v1372_v8, 0.0  ;;  %v1374_v11 = vmul.f32 %v1348_v43, %v1266_v10  ;;  %v1268_v14 = vmax.f32 %v1236_v0, %v1252_v5  ;;  %456 = vst.msk [vmem:[#allocation2] sm:$0xff] %vm455_vm1, %v2025_v17  ;;  %1882 = vmatprep.subr.mxu0 %v2025_v17  ;;  %v1538_v10 = vld [vmem:[%s2384_s5] sm:$0xff] }
  0xfa   : > { %v1419_v12 = vsel %vm570_vm0, %v1375_v63, 0.0  ;;  %1884 = vmatprep.mubr.msk.f32.mxu0 %vm2026_vm2, %v2025_v17  ;;  %v1447_v29 = vadd.s32 4294967288, %v1442_v28  ;;  %v1445_v35 = vsub.s32 %v1442_v28, %v2170_v13  ;;  %v1540_v63 = vld [vmem:[%s450_s8] sm:$0xff] }
  0xfb   : > { %1408 = vadd.xlane.f32.xlu1 %v1407_v3  ;;  %v1416_v15 = vsel %vm570_vm0, %v1374_v11, 0.0  ;;  %v1376_v16 = vmul.f32 %v1352_v61, %v1268_v14 }
  0xfc   : > { %v1450_v34 = vsub.s32 %v1447_v29, %v2170_v13 }
  0xfd   : > { %1405 = vadd.xlane.f32.xlu0 %v1404_v9  ;;  %v1422_v60 = vsel %vm570_vm0, %v1376_v16, 0.0 }
  0xff   : > { %1414 = vadd.xlane.f32.xlu1 %v1413_v21 }
 0x100   : > { %v1270_v31 = vld [vmem:[#allocation2] sm:$0xff] }
 0x101   : > { %1411 = vadd.xlane.f32.xlu0 %v1410_v53 }
 0x103   : > { %1420 = vadd.xlane.f32.xlu1 %v1419_v12 }
 0x105   : > { %1417 = vadd.xlane.f32.xlu0 %v1416_v15 }
 0x109   : > { %1423 = vadd.xlane.f32.xlu0 %v1422_v60 }
 0x172   : > { %v1388_v51 = vpop.xlane.xlu0 %1387 }
 0x173   : > { %v1382_v19 = vpop.xlane.xlu1 %1381  ;;  %v1461_v39 = vrot.slane %v1388_v51, %v1450_v34 }
 0x174   : > { %v1451_v43 = vrot.slane %v1382_v19, %v1450_v34 }
 0x176   : > { %v1379_v22 = vpop.xlane.xlu0 %1378 }
 0x177   : > { %v1446_v40 = vrot.slane %v1379_v22, %v1445_v35 }
 0x178   : > { %v1391_v23 = vpop.xlane.xlu1 %1390 }
 0x179   : > { %v1466_v42 = vrot.slane %v1391_v23, %v1445_v35  ;;  %v1453_v20 = vsel %vm1452_vm3, %v1451_v43, %v1446_v40 }
 0x17a   : > { %v1385_v24 = vpop.xlane.xlu0 %1384 }
 0x17b   : > { %v1457_v36 = vrot.slane %v1385_v24, %v1445_v35 }
 0x17c   : > { %v1397_v25 = vpop.xlane.xlu1 %1396 }
 0x17d   : > { %v1462_v44 = vsel %vm1452_vm3, %v1461_v39, %v1457_v36  ;;  %v1475_v46 = vrot.slane %v1397_v25, %v1445_v35 }
 0x17e   : > { %v1394_v27 = vpop.xlane.xlu0 %1393  ;;  %v1518_v54 = vsel %vm1517_vm4, %v1462_v44, %v1453_v20 }
 0x17f   : > { %v1470_v37 = vrot.slane %v1394_v27, %v1450_v34 }
 0x180   : > { %v1403_v26 = vpop.xlane.xlu1 %1402 }
 0x181   : > { %v1471_v48 = vsel %vm1452_vm3, %v1470_v37, %v1466_v42  ;;  %v1484_v13 = vrot.slane %v1403_v26, %v1445_v35 }
 0x182   : > { %v1400_v18 = vpop.xlane.xlu0 %1399  ;;  %v1520_v58 = vsel %vm1519_vm5, %v1471_v48, %v1518_v54 }
 0x183   : > { %v1479_v41 = vrot.slane %v1400_v18, %v1450_v34 }
 0x184   : > { %v1409_v30 = vpop.xlane.xlu1 %1408 }
 0x185   : > { %v1480_v50 = vsel %vm1452_vm3, %v1479_v41, %v1475_v46  ;;  %v1493_v52 = vrot.slane %v1409_v30, %v1445_v35 }
 0x186   : > { %v1406_v33 = vpop.xlane.xlu0 %1405  ;;  %v1522_v61 = vsel %vm1521_vm6, %v1480_v50, %v1520_v58 }
 0x187   : > { %v1488_v6 = vrot.slane %v1406_v33, %v1450_v34 }
 0x188   : > { %v1415_v38 = vpop.xlane.xlu1 %1414 }
 0x189   : > { %v1489_v55 = vsel %vm1452_vm3, %v1488_v6, %v1484_v13  ;;  %v1502_v56 = vrot.slane %v1415_v38, %v1445_v35 }
 0x18a   : > { %v1412_v32 = vpop.xlane.xlu0 %1411  ;;  %v1524_v1 = vsel %vm1523_vm7, %v1489_v55, %v1522_v61 }
 0x18b   : > { %v1497_v47 = vrot.slane %v1412_v32, %v1450_v34 }
 0x18c   : > { %v1421_v57 = vpop.xlane.xlu1 %1420 }
 0x18d   : > { %v1498_v59 = vsel %vm1452_vm3, %v1497_v47, %v1493_v52  ;;  %v1511_v7 = vrot.slane %v1421_v57, %v1445_v35 }
 0x18e   : > { %v1418_v49 = vpop.xlane.xlu0 %1417  ;;  %v1526_v3 = vsel %vm1525_vm8, %v1498_v59, %v1524_v1 }
 0x18f   : > { %v1506_v45 = vrot.slane %v1418_v49, %v1450_v34 }
 0x191   : > { %v1507_v62 = vsel %vm1452_vm3, %v1506_v45, %v1502_v56 }
 0x192   : > { %v1424_v0 = vpop.xlane.xlu0 %1423  ;;  %v1528_v4 = vsel %vm1527_vm9, %v1507_v62, %v1526_v3 }
 0x193   : > { %v1515_v2 = vrot.slane %v1424_v0, %v1450_v34 }
 0x195   : > { %v1516_v5 = vsel %vm1452_vm3, %v1515_v2, %v1511_v7 }
 0x196   : > { %v1530_v8 = vsel %vm1529_vm10, %v1516_v5, %v1528_v4 }
 0x197   : > { %v1532_v9 = vadd.f32 %v1530_v8, %v1270_v31 }
 0x199   : > { %1534 = vst.msk [vmem:[#allocation2] sm:$0xff] %vm455_vm1, %v1532_v9 }
 0x1a0   : > { %v1539_v21 = vld [vmem:[#allocation2] sm:$0xff] }
 0x1a1   : > { %1883 = vmatpush3.xpose.msk.msra.mxu0 %vm455_vm1, %v1539_v21 }
 0x1a4   : > { %1885 = vmatmul.mubr.msk.f32.vlgmr.msra.gmra.mxu0 %vm455_vm1, %v1538_v10 }
 0x264   : > { %v1613_v53 = vpop.f32.mrf.mxu0 }
 0x265   : > { %v1614_v11 = vadd.f32 %v1613_v53, %v1540_v63 }
 0x266   : > { %v1886_v12 = vpop.f32.mrf.mxu0 }
 0x267   : > { %1617 = vst.msk [vmem:[%s405_s12] sm:$0xff] %vm570_vm0, %v1614_v11 }
 0x268   : > { %1959 = shalt.err (!%p1956_p5)
}
 0x269   : > { %s1960_s30 = scalar_lea.hbm %s2338_s19, 128  ;;  %s1964_s8 = scalar_lea.hbm %s2386_s7, 256 }
 0x26a   : > { %p1961_p6 = scmp.ne.s32.totalorder %s2338_s19, %s1960_s30  ;;  %p1965_p10 = scmp.lt.s32.totalorder %s2338_s19, %s2386_s7 }
 0x26b   : > { %p1966_p11 = scmp.lt.s32.totalorder %s1964_s8, %s1960_s30 }
 0x26c   : > { %p1962_p7 = pnand %p1961_p6, %p2108_p4 }
 0x26d   : > { %p1967_p12 = por %p1966_p11, %p1965_p10 }
 0x26e   : > { %p1963_p9 = pneg %p1962_p7 }
 0x270   : > { %p1968_p13 = pnand %p1967_p12, %p1963_p9 }
 0x272   : > { %1971 = shalt.err (!%p1968_p13)
}
 0x273   : > { %1887 = dma.vmem_to_hbm [thread:$0]  (%p2108_p4), %s1634_s15, 128, %s2338_s19, %s1619_s21  }
 0x274 PF: > { %p1893_p0 = scmp.ge.s32.totalorder %s2022_s29, 2  ;;  %s1645_s0 = sand.u32 1, %s2002_s24  }
 0x275   : > { %s1646_s16 = scalar_lea.sflag [#allocation4], %s1645_s0 }
 0x276   : > { %p1890_p1 = pnand %p1893_p0, %p2115_p8 }
 0x278   : > { %p1891_p2 = pneg %p1890_p1 }
 0x27a   : > { %1997 = dma.done.wait (%p1891_p2), %s1646_s16, 128  }
 0x27b   : > { %1999 = vsyncadd (%p1891_p2), %s1646_s16, 4294967168  ;;  %s20_s29 = sadd.s32 1, %s2022_s29   ;;  %s2391_s24 = smov %s2006_s25 }
 0x27c   : > { %p17_p3 = scmp.ge.s32.totalorder %s20_s29, 4   ;;  %s2392_s25 = smov %s2010_s26 }
 0x27d   : > { %s2393_s26 = smov %s2121_s14  ;;  %s2394_s27 = smov %s2018_s28 }
 0x27e   : > { %s2395_s28 = smov %s2397_s9  ;;  %19 = sbr.rel (!%p17_p3) target bundleno = 6 (0x6), region = 103 }
 0x283   :  { %1651 = vsyncpa [#allocation4], 1 }
 0x284   :  { %1653 = vsyncpa [#allocation4 + $0x1], 1 }

</bundles_post_ra>
